<compile_context>
chip_gen: v6e
topology: v6e:2x2x1
jax: 0.10.0
libtpu: 0.0.40
codegen_flags: <defaults>
</compile_context>

<pallas_src>
import jax
import jax.numpy as jnp
from jax.experimental import pallas as pl
from jax.experimental.pallas import tpu as pltpu


_LANES = 128


def _tile_budget():
    """Pick (max lane-tile, scoped-VMEM limit in bytes) per TPU generation."""
    # Safe default (v5e / unknown): 32768-lane tiles -> x block 4 MiB,
    # real footprint (double-buffered x + 8-sublane-padded out + temps) ~14 MiB.
    max_lanes, vmem_limit = 32768, 28 * 1024 * 1024
    try:
        kind = jax.devices()[0].device_kind.lower().replace(" ", "")
    except Exception:
        return max_lanes, vmem_limit
    if "v7" in kind or "7x" in kind:
        # v7x: ~3.2 TB/s HBM, 64 MiB VMEM/TC -> bigger tiles amortize the
        # fixed per-grid-step cost; budget ~30 MiB, leave margin under physical.
        max_lanes, vmem_limit = 65536, 40 * 1024 * 1024
    elif "v6" in kind:
        # v6e: 128 MiB physical VMEM, plenty of headroom; 64K lanes is a small
        # (~1-3%) win over 32K but costs nothing.
        max_lanes, vmem_limit = 65536, 64 * 1024 * 1024
    elif "v5e" in kind or "v5lite" in kind:
        max_lanes, vmem_limit = 32768, 28 * 1024 * 1024
    return max_lanes, vmem_limit


def _model_tanh_kernel(x_ref, w_ref, b_ref, x5_ref, o_ref):
    # x_ref : (Bb, C, THW) VMEM  -- Bb batch elements, one spatial tile
    # w_ref : (C, 1)       VMEM  -- 1x1-conv weight (constant across grid)
    # b_ref : (1, 1)       SMEM  -- conv bias (scalar)
    # x5_ref: (Bb, 3, 1)   VMEM  -- per-batch broadcast multipliers
    # o_ref : (Bb, 3, THW) VMEM
    w = w_ref[...]                       # (C, 1)
    bias = b_ref[0, 0]
    bb = x_ref.shape[0]
    for i in range(bb):                  # static unroll; bb is small (<= 8)
        # 1x1 conv == exact f32 channel contraction: VPU mul + XLU sublane reduce.
        s = jnp.sum(w * x_ref[i], axis=0, keepdims=True)      # (1, THW)
        v = jnp.tanh(s + bias)                                 # (1, THW), EUP
        # (3,1) * (1,THW) broadcast -> one lane-dense (3, THW) store.
        o_ref[i] = (x5_ref[i] * v).astype(o_ref.dtype)


def model_tanh_forward(x, x5, weight, bias):
    """x: (B, C_in, H, W) f32; x5: (B, 3, 1, 1) f32;
    weight: (1, C_in, 1, 1) f32; bias: (1,) f32."""
    B, C, H, W = x.shape
    HW = H * W
    max_lanes, vmem_limit = _tile_budget()

    # Spatial tiling without any host-side padding:
    #  - single full-extent tile when HW fits (no 128 constraint needed),
    #  - otherwise a 128-multiple tile that (nearly) divides HW; the ragged
    #    last block is clipped by Pallas (masked store / clipped DMA).
    if HW <= max_lanes:
        thw = HW
        n_tiles = 1
    else:
        n_hw_tiles = pl.cdiv(HW, max_lanes)
        thw = pl.cdiv(pl.cdiv(HW, n_hw_tiles), _LANES) * _LANES
        n_tiles = pl.cdiv(HW, thw)

    # Small-image regime: fold several batch elements per block so the
    # ~0.35 us per-grid-step overhead is amortized.  Keep the folded x block
    # within the same byte budget as one full-size tile; require Bb | B.
    row_bytes = C * thw * 4
    target_bytes = max_lanes * C * 4
    bb_cap = int(max(1, min(8, B, target_bytes // max(row_bytes, 1))))
    Bb = 1
    for d in range(1, B + 1):
        if B % d == 0 and d <= bb_cap:
            Bb = d

    x_flat = x.reshape(B, C, HW).astype(jnp.float32)         # no padding copy
    w2d = weight.reshape(C, 1).astype(jnp.float32)            # (C, 1)   VMEM
    b2d = bias.reshape(1, 1).astype(jnp.float32)              # (1, 1)   SMEM
    x5_3d = x5.reshape(B, 3, 1).astype(jnp.float32)           # (B, 3, 1) VMEM

    # Honest advisory cost: what the kernel actually DMAs (ragged tile
    # over-count is bounded by one tile's padding).
    cost = pl.CostEstimate(
        flops=int(B * HW * (2 * C + 4)),
        transcendentals=int(B * HW),
        bytes_accessed=int(4 * (B * C * n_tiles * thw + B * 3 * HW
                                + C + 1 + 3 * B)),
    )

    out_flat = pl.pallas_call(
        _model_tanh_kernel,
        out_shape=jax.ShapeDtypeStruct((B, 3, HW), jnp.float32),
        grid_spec=pltpu.PrefetchScalarGridSpec(
            num_scalar_prefetch=0,
            grid=(B // Bb, n_tiles),
            in_specs=[
                pl.BlockSpec((Bb, C, thw), lambda b, t: (b, 0, t)),
                pl.BlockSpec((C, 1), lambda b, t: (0, 0)),
                pl.BlockSpec(memory_space=pltpu.MemorySpace.SMEM),
                pl.BlockSpec((Bb, 3, 1), lambda b, t: (b, 0, 0)),
            ],
            out_specs=pl.BlockSpec((Bb, 3, thw), lambda b, t: (b, 0, t)),
        ),
        compiler_params=pltpu.CompilerParams(
            dimension_semantics=("parallel", "parallel"),
            vmem_limit_bytes=vmem_limit,
        ),
        cost_estimate=cost,
    )(x_flat, w2d, b2d, x5_3d)

    # (B, 3, HW) -> (B, 3, H, W) is a free contiguous reshape (no HBM pass).
    return out_flat.reshape(B, 3, H, W)


if __name__ == "__main__":
    key = jax.random.PRNGKey(0)
    k_x, k_x5, k_w, k_b = jax.random.split(key, 4)

    # Small shapes consistent with the module: conv requires 32 input channels.
    B, C, H, W = 2, 32, 4, 4

    x = jax.random.normal(k_x, (B, C, H, W), dtype=jnp.float32)
    x5 = jax.random.normal(k_x5, (B, 3, 1, 1), dtype=jnp.float32)

    # Deterministic parameter init (Conv2d(32, 1, kernel_size=1) shapes).
    fan_in = C * 1 * 1
    bound = 1.0 / (fan_in ** 0.5)
    weight = jax.random.uniform(k_w, (1, C, 1, 1), jnp.float32, -bound, bound)
    bias = jax.random.uniform(k_b, (1,), jnp.float32, -bound, bound)

    out = model_tanh_forward(x, x5, weight, bias)
    out = jax.block_until_ready(out)

    # Pure-JAX reference check (1x1 conv == channel contraction).
    v1 = jnp.einsum("bchw,oc->bohw", x, weight.reshape(1, C)) + bias.reshape(1, 1, 1, 1)
    ref = jnp.tanh(v1) * x5
    assert out.shape == (B, 3, H, W)
    assert jnp.allclose(out, ref, atol=1e-5, rtol=1e-5)

    print("KERNEL_OK")
</pallas_src>

<mosaic_0001>
module attributes {stable_mosaic.version = 11 : i64} {
  func.func @_model_tanh_kernel(%arg0: i32, %arg1: i32, %arg2: memref<2x32x16xf32, #tpu.memory_space<vmem>>, %arg3: memref<32x1xf32, #tpu.memory_space<vmem>>, %arg4: memref<1x1xf32, #tpu.memory_space<smem>>, %arg5: memref<2x3x1xf32, #tpu.memory_space<vmem>>, %arg6: memref<2x3x16xf32, #tpu.memory_space<vmem>>) attributes {dimension_semantics = [#tpu.dimension_semantics<parallel>, #tpu.dimension_semantics<parallel>], iteration_bounds = array<i64: 1, 1>, scalar_prefetch = 0 : i64, scratch_operands = 0 : i64, tpu.core_type = #tpu.core_type<tc>, window_params = [{transform_indices = @transform_0, window_bounds = array<i64: 2, 32, 16>}, {pipeline_mode = #tpu.pipeline_mode<synchronous>, transform_indices = @transform_1, window_bounds = array<i64: 32, 1>}, {transform_indices = @transform_2, window_bounds = array<i64: 1, 1>}, {transform_indices = @transform_3, window_bounds = array<i64: 2, 3, 1>}, {transform_indices = @transform_4, window_bounds = array<i64: 2, 3, 16>}]} {
    %c0 = arith.constant 0 : index
    %c0_0 = arith.constant 0 : index
    %0 = vector.load %arg3[%c0, %c0_0] : memref<32x1xf32, #tpu.memory_space<vmem>>, vector<32x1xf32>
    %c0_1 = arith.constant 0 : index
    %c0_2 = arith.constant 0 : index
    %1 = memref.load %arg4[%c0_1, %c0_2] : memref<1x1xf32, #tpu.memory_space<smem>>
    %c0_3 = arith.constant 0 : index
    %c0_4 = arith.constant 0 : index
    %c0_5 = arith.constant 0 : index
    %2 = vector.load %arg2[%c0_3, %c0_4, %c0_5] : memref<2x32x16xf32, #tpu.memory_space<vmem>>, vector<1x32x16xf32>
    %3 = vector.shape_cast %2 : vector<1x32x16xf32> to vector<32x16xf32>
    %4 = vector.broadcast %0 : vector<32x1xf32> to vector<32x16xf32>
    %5 = arith.mulf %4, %3 : vector<32x16xf32>
    %cst = arith.constant dense<0.000000e+00> : vector<16xf32>
    %6 = vector.multi_reduction <add>, %5, %cst [0] : vector<32x16xf32> to vector<16xf32>
    %7 = vector.shape_cast %6 : vector<16xf32> to vector<1x16xf32>
    %8 = vector.broadcast %1 : f32 to vector<1x16xf32>
    %9 = arith.addf %7, %8 : vector<1x16xf32>
    %10 = math.tanh %9 : vector<1x16xf32>
    %c0_6 = arith.constant 0 : index
    %c0_7 = arith.constant 0 : index
    %c0_8 = arith.constant 0 : index
    %11 = vector.load %arg5[%c0_6, %c0_7, %c0_8] : memref<2x3x1xf32, #tpu.memory_space<vmem>>, vector<1x3x1xf32>
    %12 = vector.shape_cast %11 : vector<1x3x1xf32> to vector<3x1xf32>
    %13 = vector.broadcast %12 : vector<3x1xf32> to vector<3x16xf32>
    %14 = vector.broadcast %10 : vector<1x16xf32> to vector<3x16xf32>
    %15 = arith.mulf %13, %14 : vector<3x16xf32>
    %c0_9 = arith.constant 0 : index
    %c0_10 = arith.constant 0 : index
    %c0_11 = arith.constant 0 : index
    %16 = vector.load %arg6[%c0_9, %c0_10, %c0_11] : memref<2x3x16xf32, #tpu.memory_space<vmem>>, vector<1x3x16xf32>
    %17 = vector.shape_cast %16 : vector<1x3x16xf32> to vector<3x16xf32>
    %18 = vector.shape_cast %15 : vector<3x16xf32> to vector<1x3x16xf32>
    tpu.vector_store %arg6[%c0_9, %c0_10, %c0_11], %18 {strides = array<i32>} : memref<2x3x16xf32, #tpu.memory_space<vmem>>, vector<1x3x16xf32>,
    %c1 = arith.constant 1 : index
    %c0_12 = arith.constant 0 : index
    %c0_13 = arith.constant 0 : index
    %19 = vector.load %arg2[%c1, %c0_12, %c0_13] : memref<2x32x16xf32, #tpu.memory_space<vmem>>, vector<1x32x16xf32>
    %20 = vector.shape_cast %19 : vector<1x32x16xf32> to vector<32x16xf32>
    %21 = vector.broadcast %0 : vector<32x1xf32> to vector<32x16xf32>
    %22 = arith.mulf %21, %20 : vector<32x16xf32>
    %cst_14 = arith.constant dense<0.000000e+00> : vector<16xf32>
    %23 = vector.multi_reduction <add>, %22, %cst_14 [0] : vector<32x16xf32> to vector<16xf32>
    %24 = vector.shape_cast %23 : vector<16xf32> to vector<1x16xf32>
    %25 = vector.broadcast %1 : f32 to vector<1x16xf32>
    %26 = arith.addf %24, %25 : vector<1x16xf32>
    %27 = math.tanh %26 : vector<1x16xf32>
    %c1_15 = arith.constant 1 : index
    %c0_16 = arith.constant 0 : index
    %c0_17 = arith.constant 0 : index
    %28 = vector.load %arg5[%c1_15, %c0_16, %c0_17] : memref<2x3x1xf32, #tpu.memory_space<vmem>>, vector<1x3x1xf32>
    %29 = vector.shape_cast %28 : vector<1x3x1xf32> to vector<3x1xf32>
    %30 = vector.broadcast %29 : vector<3x1xf32> to vector<3x16xf32>
    %31 = vector.broadcast %27 : vector<1x16xf32> to vector<3x16xf32>
    %32 = arith.mulf %30, %31 : vector<3x16xf32>
    %c1_18 = arith.constant 1 : index
    %c0_19 = arith.constant 0 : index
    %c0_20 = arith.constant 0 : index
    %33 = vector.load %arg6[%c1_18, %c0_19, %c0_20] : memref<2x3x16xf32, #tpu.memory_space<vmem>>, vector<1x3x16xf32>
    %34 = vector.shape_cast %33 : vector<1x3x16xf32> to vector<3x16xf32>
    %35 = vector.shape_cast %32 : vector<3x16xf32> to vector<1x3x16xf32>
    tpu.vector_store %arg6[%c1_18, %c0_19, %c0_20], %35 {strides = array<i32>} : memref<2x3x16xf32, #tpu.memory_space<vmem>>, vector<1x3x16xf32>,
    return
  }
  func.func @transform_0(%arg0: i32, %arg1: i32) -> (i32, i32, i32) {
    %c0_i32 = arith.constant 0 : i32
    %c0_i32_0 = arith.constant 0 : i32
    return %arg0, %c0_i32, %arg1 : i32, i32, i32
  }
  func.func @transform_1(%arg0: i32, %arg1: i32) -> (i32, i32) {
    %c0_i32 = arith.constant 0 : i32
    %c0_i32_0 = arith.constant 0 : i32
    %c0_i32_1 = arith.constant 0 : i32
    return %c0_i32, %c0_i32_0 : i32, i32
  }
  func.func @transform_2(%arg0: i32, %arg1: i32) -> (i32, i32) {
    %c0_i32 = arith.constant 0 : i32
    %c0_i32_0 = arith.constant 0 : i32
    %c0_i32_1 = arith.constant 0 : i32
    return %c0_i32, %c0_i32_0 : i32, i32
  }
  func.func @transform_3(%arg0: i32, %arg1: i32) -> (i32, i32, i32) {
    %c0_i32 = arith.constant 0 : i32
    %c0_i32_0 = arith.constant 0 : i32
    %c0_i32_1 = arith.constant 0 : i32
    return %arg0, %c0_i32, %c0_i32_0 : i32, i32, i32
  }
  func.func @transform_4(%arg0: i32, %arg1: i32) -> (i32, i32, i32) {
    %c0_i32 = arith.constant 0 : i32
    %c0_i32_0 = arith.constant 0 : i32
    return %arg0, %c0_i32, %arg1 : i32, i32, i32
  }
}

</mosaic_0001>

<bundles_post_ra>
// kernel: tpu_custom_call.1
= control target key start
LH: loop header
LB: loop body
LE: loop exit
PB: predicated region body
PF: predicated region fallthrough
CT: control target
= control target key end

     0   :  { %v128_v0 = vmov 0   ;;  %vm51_vm0 = vcmask 130048   ;;  %vm75_vm1 = vcmask 124928   ;;  %s213_s1 = inlined_call_operand.vmem [shape: f32[32,1], index: 1, kind: input, shape index: {}]   ;;  %s214_s3 = inlined_call_operand.vmem [shape: f32[2,3,1], index: 3, kind: input, shape index: {}]   ;;  %s215_s0 = inlined_call_operand.vmem [shape: f32[2,32,16], index: 0, kind: input, shape index: {}]   ;;  %s216_s2 = inlined_call_operand.<no memory space> [shape: f32[1,1], index: 2, kind: input, shape index: {}]   ;;  %s217_s4 = inlined_call_operand.vmem [shape: f32[2,3,16], index: 4, kind: output, shape index: {}]  }
   0x1   :  { %123 = vset.pattern.permute.xlu1 %v128_v0  ;;  %122 = vset.pattern.permute.xlu0 %v128_v0  ;;  %v20_v1 = vld [vmem:[%s213_s1 + $0x10] sm:$0xff]  ;;  %v18_v2 = vld [vmem:[%s213_s1] sm:$0xff]  ;;  %v21_v3 = vld [vmem:[%s213_s1 + $0x18] sm:$0xff]  ;;  %v65_v51 = vstv %s216_s2 }
   0x2   :  { %39 = vperm.xlu1 %123, %v20_v1   ;;  %29 = vperm.xlu0 %122, %v18_v2   ;;  %v19_v4 = vld [vmem:[%s213_s1 + $0x8] sm:$0xff]  ;;  %v119_v5 = vld [vmem:[%s214_s3 + $0x4] sm:$0x7]  ;;  %v68_v6 = vld [vmem:[%s214_s3] sm:$0x7] }
   0x3   :  { %v23_v7 = vld [vmem:[%s215_s0] sm:$0xff]  ;;  %v25_v11 = vld [vmem:[%s215_s0 + $0x10] sm:$0xff]  ;;  %v24_v15 = vld [vmem:[%s215_s0 + $0x8] sm:$0xff] }
   0x4   :  { %v115_v8 = vld [vmem:[%s215_s0 + $0x20] sm:$0xff]  ;;  %v117_v12 = vld [vmem:[%s215_s0 + $0x30] sm:$0xff]  ;;  %v116_v16 = vld [vmem:[%s215_s0 + $0x28] sm:$0xff] }
   0x5   :  { %v26_v18 = vld [vmem:[%s215_s0 + $0x18] sm:$0xff] }
   0x6   :  { %44 = vperm.xlu1 %123, %v21_v3   ;;  %34 = vperm.xlu0 %122, %v19_v4   ;;  %v118_v19 = vld [vmem:[%s215_s0 + $0x38] sm:$0xff] }
   0xa   :  { %105 = vperm.xlu1 %123, %v119_v5   ;;  %71 = vperm.xlu0 %122, %v68_v6  }
  0x7d   :  { %v40_v9 = vpop.permute.xlu1 %39  ;;  %v30_v10 = vpop.permute.xlu0 %29 }
  0x7e   :  { %v47_v13 = vmul.f32 %v30_v10, %v23_v7  ;;  %v82_v14 = vmul.f32 %v115_v8, %v30_v10  ;;  %v49_v21 = vmul.f32 %v40_v9, %v25_v11  ;;  %v84_v22 = vmul.f32 %v117_v12, %v40_v9 }
  0x80   :  { %v52_v25 = vsel %vm51_vm0, %v47_v13, 0.0  ;;  %v86_v26 = vsel %vm51_vm0, %v82_v14, 0.0  ;;  %v55_v33 = vsel %vm51_vm0, %v49_v21, 0.0  ;;  %v89_v34 = vsel %vm51_vm0, %v84_v22, 0.0 }
  0x81   :  { %v45_v17 = vpop.permute.xlu1 %44  ;;  %v35_v20 = vpop.permute.xlu0 %34 }
  0x82   :  { %v48_v23 = vmul.f32 %v35_v20, %v24_v15  ;;  %v83_v24 = vmul.f32 %v116_v16, %v35_v20  ;;  %v50_v27 = vmul.f32 %v45_v17, %v26_v18  ;;  %v85_v28 = vmul.f32 %v118_v19, %v45_v17 }
  0x84   :  { %v53_v29 = vsel %vm51_vm0, %v48_v23, 0.0  ;;  %v87_v30 = vsel %vm51_vm0, %v83_v24, 0.0  ;;  %v57_v37 = vsel %vm51_vm0, %v50_v27, 0.0  ;;  %v91_v38 = vsel %vm51_vm0, %v85_v28, 0.0 }
  0x85   :  { %v54_v31 = vadd.f32 %v53_v29, %v52_v25  ;;  %v88_v32 = vadd.f32 %v87_v30, %v86_v26  ;;  %v106_v57 = vpop.permute.xlu1 %105  ;;  %v72_v60 = vpop.permute.xlu0 %71 }
  0x87   :  { %v56_v35 = vadd.f32 %v55_v33, %v54_v31  ;;  %v90_v36 = vadd.f32 %v89_v34, %v88_v32 }
  0x89   :  { %v58_v39 = vadd.f32 %v57_v37, %v56_v35  ;;  %v92_v40 = vadd.f32 %v91_v38, %v90_v36 }
  0x8b   :  { %v59_v41 = vrot.slane %v58_v39, 4  ;;  %v93_v42 = vrot.slane %v92_v40, 4 }
  0x8d   :  { %v60_v43 = vadd.f32 %v59_v41, %v58_v39  ;;  %v94_v44 = vadd.f32 %v93_v42, %v92_v40 }
  0x8f   :  { %v61_v45 = vrot.slane %v60_v43, 2  ;;  %v95_v46 = vrot.slane %v94_v44, 2 }
  0x91   :  { %v62_v47 = vadd.f32 %v61_v45, %v60_v43  ;;  %v96_v48 = vadd.f32 %v95_v46, %v94_v44 }
  0x93   :  { %v63_v49 = vrot.slane %v62_v47, 1  ;;  %v97_v50 = vrot.slane %v96_v48, 1 }
  0x95   :  { %v64_v52 = vadd.f32 %v63_v49, %v62_v47  ;;  %v98_v53 = vadd.f32 %v97_v50, %v96_v48 }
  0x97   :  { %v99_v54 = vadd.f32 %v98_v53, %v65_v51  ;;  %v66_v55 = vadd.f32 %v65_v51, %v64_v52 }
  0x99   :  { %124 = vtanh.f32 %v99_v54 }
  0x9a   :  { %126 = vtanh.f32 %v66_v55 }
  0xa6   :  { %v125_v56 = vpop.eup %124 }
  0xa7   :  { %v127_v58 = vpop.eup %126  ;;  %v108_v59 = vmul.f32 %v125_v56, %v106_v57 }
  0xa8   :  { %v74_v61 = vmul.f32 %v127_v58, %v72_v60 }
  0xa9   :  { %120 = vst.msk [vmem:[%s217_s4 + $0x4] sm:$0x7] %vm75_vm1, %v108_v59 }
  0xaa   :  { %76 = vst.msk [vmem:[%s217_s4] sm:$0x7] %vm75_vm1, %v74_v61 }

</bundles_post_ra>
